<compile_context>
chip_gen: v5e
topology: v5e:2x2
jax: 0.10.0
libtpu: 0.0.40
codegen_flags: <defaults>
</compile_context>

<pallas_src>
import jax
import jax.numpy as jnp
from jax import lax
from jax.experimental import pallas as pl
from jax.experimental.pallas import tpu as pltpu  # noqa: F401  (TPU backend)


def linear_add_kernel(x1_ref, wt_ref, b_ref, x2_ref, o_ref):
    # x1: [B, IN], wt: [IN, OUT] (pre-transposed once at init), b: [1, OUT],
    # x2: [B, OUT] (HBM-aliased with o), o: [B, OUT]
    y = lax.dot_general(
        x1_ref[...],
        wt_ref[...],
        dimension_numbers=(((1,), (0,)), ((), ())),  # x1 @ w.T with w stored as [IN, OUT]
        preferred_element_type=jnp.float32,
    )
    # Bias + residual fused with the cast; single (masked) store.
    o_ref[...] = (y + b_ref[...] + x2_ref[...]).astype(o_ref.dtype)


def init_linear_params(w, b):
    """One-time parameter prep (hoisted out of the per-call path).

    w: PyTorch-layout [OUT, IN]  ->  [IN, OUT]
    b: [OUT]                     ->  [1, OUT]
    """
    return jnp.asarray(w).T, jnp.asarray(b).reshape(1, -1)


def linear_add(x1, w_t, b_row, x2):
    """y = x1 @ w.T + b + x2  (nn.Linear(IN, OUT) + residual), w_t/b_row pre-prepped."""
    B, IN = x1.shape
    IN_w, OUT = w_t.shape
    assert IN == IN_w and x2.shape == (B, OUT) and b_row.shape == (1, OUT)

    itemsize = jnp.dtype(x1.dtype).itemsize
    bytes_accessed = (x1.size + w_t.size + b_row.size + x2.size + B * OUT) * itemsize

    # No grid: one invocation, whole arrays resident in VMEM via the default
    # whole-array BlockSpecs (exempt from the (8,128) divisibility rule).
    return pl.pallas_call(
        linear_add_kernel,
        out_shape=jax.ShapeDtypeStruct((B, OUT), x1.dtype),
        input_output_aliases={3: 0},  # residual x2's HBM buffer is reused for the output
        cost_estimate=pl.CostEstimate(
            flops=2 * B * IN * OUT,
            transcendentals=0,
            bytes_accessed=bytes_accessed,
        ),
    )(x1, w_t, b_row, x2)


if __name__ == "__main__":
    key = jax.random.PRNGKey(0)
    k_x1, k_x2, k_w, k_b = jax.random.split(key, 4)

    B, IN, OUT = 1, 8, 8
    x1 = jax.random.normal(k_x1, (B, IN), dtype=jnp.float32)
    x2 = jax.random.normal(k_x2, (B, OUT), dtype=jnp.float32)

    # Deterministic "Linear(8, 8)" parameters (torch default init range).
    bound = 1.0 / (IN ** 0.5)
    w = jax.random.uniform(k_w, (OUT, IN), minval=-bound, maxval=bound, dtype=jnp.float32)
    b = jax.random.uniform(k_b, (OUT,), minval=-bound, maxval=bound, dtype=jnp.float32)

    # One-time parameter prep (outside the per-call path).
    w_t, b_row = init_linear_params(w, b)

    # Reference in plain JAX (computed against the original, un-donated x2).
    y_ref = x1 @ w.T + b + x2

    y = jax.jit(linear_add)(x1, w_t, b_row, x2)
    jax.block_until_ready(y)

    assert y.shape == (B, OUT)
    assert jnp.allclose(y, y_ref, atol=1e-5, rtol=1e-5), "mismatch vs reference"

    print("KERNEL_OK")
</pallas_src>

<mosaic_0001>
module attributes {stable_mosaic.version = 11 : i64} {
  func.func @linear_add_kernel(%arg0: memref<1x8xf32, #tpu.memory_space<vmem>>, %arg1: memref<8x8xf32, #tpu.memory_space<vmem>>, %arg2: memref<1x8xf32, #tpu.memory_space<vmem>>, %arg3: memref<1x8xf32, #tpu.memory_space<vmem>>, %arg4: memref<1x8xf32, #tpu.memory_space<vmem>>) attributes {dimension_semantics = [], scalar_prefetch = 0 : i64, scratch_operands = 0 : i64, tpu.core_type = #tpu.core_type<tc>} {
    %c0 = arith.constant 0 : index
    %c0_0 = arith.constant 0 : index
    %0 = vector.load %arg0[%c0, %c0_0] : memref<1x8xf32, #tpu.memory_space<vmem>>, vector<1x8xf32>
    %c0_1 = arith.constant 0 : index
    %c0_2 = arith.constant 0 : index
    %1 = vector.load %arg1[%c0_1, %c0_2] : memref<8x8xf32, #tpu.memory_space<vmem>>, vector<8x8xf32>
    %cst = arith.constant dense<0.000000e+00> : vector<1x8xf32>
    %2 = tpu.matmul %0, %1, %cst {dimension_numbers = #tpu.dot_dimension_numbers<[1], [0], [0], [1], [0, 0, 1, 1], [], []>} : vector<1x8xf32>, vector<8x8xf32>, vector<1x8xf32> -> vector<1x8xf32>
    %c0_3 = arith.constant 0 : index
    %c0_4 = arith.constant 0 : index
    %3 = vector.load %arg2[%c0_3, %c0_4] : memref<1x8xf32, #tpu.memory_space<vmem>>, vector<1x8xf32>
    %4 = arith.addf %2, %3 : vector<1x8xf32>
    %c0_5 = arith.constant 0 : index
    %c0_6 = arith.constant 0 : index
    %5 = vector.load %arg3[%c0_5, %c0_6] : memref<1x8xf32, #tpu.memory_space<vmem>>, vector<1x8xf32>
    %6 = arith.addf %4, %5 : vector<1x8xf32>
    %c0_7 = arith.constant 0 : index
    %c0_8 = arith.constant 0 : index
    %7 = vector.load %arg4[%c0_7, %c0_8] : memref<1x8xf32, #tpu.memory_space<vmem>>, vector<1x8xf32>
    tpu.vector_store %arg4[%c0_7, %c0_8], %6 {strides = array<i32>} : memref<1x8xf32, #tpu.memory_space<vmem>>, vector<1x8xf32>,
    return
  }
}

</mosaic_0001>

<bundles_post_ra>
// kernel: linear_add.1
= control target key start
LH: loop header
LB: loop body
LE: loop exit
PB: predicated region body
PF: predicated region fallthrough
CT: control target
= control target key end

     0   :  { %9 = vsyncpa [#allocation3], 0  ;;  %s220_s0 = inlined_call_operand.vmem [shape: f32[1,8], index: 0, kind: input, shape index: {}]   ;;  %s221_s1 = inlined_call_operand.hbm [shape: f32[8,8], index: 1, kind: input, shape index: {}]   ;;  %s222_s2 = inlined_call_operand.vmem [shape: f32[1,8], index: 2, kind: input, shape index: {}]   ;;  %s223_s3 = inlined_call_operand.hbm [shape: f32[1,8], index: 3, kind: input, shape index: {}, may-alias: {3,4}]   ;;  %s224_s4 = inlined_call_operand.hbm [shape: f32[1,8], index: 4, kind: output, shape index: {}, may-alias: {3,4}]  }
   0x1   :  { %10 = vsyncpa [#allocation6], 0 }
   0x2   :  { %11 = vsyncpa [#allocation4], 0  ;;  %s19_s17 = sshll.u32 %s221_s1, 4  ;;  %s177_s18 = smov [#allocation2]   ;;  %s20_s17 = int_to_ptr.hbm [resolvable:$true] %s19_s17 }
   0x3   :  { %s21_s19 = sshll.u32 %s177_s18, 4  ;;  %s32_s22 = sshll.u32 %s223_s3, 4  ;;  %s22_s19 = int_to_ptr.vmem [resolvable:$true] %s21_s19  ;;  %s33_s22 = int_to_ptr.hbm [resolvable:$true] %s32_s22 }
   0x4   :  { %24 = dma.hbm_to_vmem [thread:$0]  %s20_s17, 128, %s22_s19, [#allocation3]  }
   0x5   :  { %s178_s23 = smov [#allocation5]  }
   0x6   :  { %s34_s24 = sshll.u32 %s178_s23, 4  ;;  %s35_s24 = int_to_ptr.vmem [resolvable:$true] %s34_s24 }
   0x7   :  { %37 = dma.hbm_to_vmem [thread:$0]  %s33_s22, 16, %s35_s24, [#allocation6]  }
   0x8   :  { %171 = dma.done.wait [#allocation3], 128  }
   0x9   :  { %172 = vsyncadd [#allocation3], 4294967168 }
   0xa   :  { %173 = dma.done.wait [#allocation6], 16  }
   0xb   :  { %174 = vsyncadd [#allocation6], 4294967280  ;;  %vm49_vm0 = vcmask 64512   ;;  %v47_v0 = vld [vmem:[#allocation2] sm:$0xff]  ;;  %v73_v4 = vld [vmem:[#allocation5] sm:$0x1] }
   0xc   :  { %v46_v1 = vld [vmem:[%s220_s0] sm:$0x1]  ;;  %68 = vmatpush.msra.mxu0 %v47_v0  ;;  %s179_s27 = smov [#allocation7]   ;;  %s84_s5 = sshll.u32 %s224_s4, 4  ;;  %vm75_vm1 = vcmask 57344   ;;  %s85_s5 = int_to_ptr.hbm [resolvable:$true] %s84_s5 }
   0xd   :  { %95 = vmatmul.msk.f32.vlgmr.msra.gmra.mxu0 %vm49_vm0, %v46_v1  ;;  %v48_v2 = vld [vmem:[%s222_s2] sm:$0x1]  ;;  %s82_s28 = sshll.u32 %s179_s27, 4  ;;  %s83_s28 = int_to_ptr.vmem [resolvable:$true] %s82_s28 }
  0x8a   :  { %v70_v3 = vpop.f32.mrf.mxu0 }
  0x8b   :  { %v71_v5 = vadd.f32 %v70_v3, %v48_v2 }
  0x8d   :  { %v74_v6 = vadd.f32 %v73_v4, %v71_v5 }
  0x8f   :  { %76 = vst.msk [vmem:[#allocation7] sm:$0x1] %vm75_vm1, %v74_v6 }
  0x90   :  { %87 = dma.vmem_to_hbm [thread:$0]  %s83_s28, 16, %s85_s5, [#allocation4]  }
  0x91   :  { %175 = dma.done.wait [#allocation4], 16  }
  0x92   :  { %176 = vsyncadd [#allocation4], 4294967280 }
  0x93   :  { %92 = vsyncpa [#allocation3], 1 }
  0x94   :  { %93 = vsyncpa [#allocation6], 1 }
  0x95   :  { %94 = vsyncpa [#allocation4], 1 }

</bundles_post_ra>
